<compile_context>
chip_gen: v7x
topology: tpu7x:2x2x1
jax: 0.10.0
libtpu: 0.0.40
codegen_flags: <defaults>
</compile_context>

<pallas_src>
import math

import jax
import jax.numpy as jnp
from jax.experimental import pallas as pl
from jax.experimental.pallas import tpu as pltpu


def _round_up(x, m):
    return ((x + m - 1) // m) * m


def _largest_divisor_at_most(n, cap):
    """Largest divisor of n that is <= cap (n >= 1, cap >= 1)."""
    for d in range(min(n, cap), 0, -1):
        if n % d == 0:
            return d
    return 1


def _one_hot_kernel(x_ref, o_ref):
    # x_ref: (RB, TS) int32 block (RB batch rows, TS spatial positions).
    # o_ref: (RB, TL, TS) block (TL classes of this class tile).
    tl = o_ref.shape[1]
    l0 = pl.program_id(2) * tl          # class axis is grid dim 2 (innermost)
    # Lane-constant class "column"; the == comparison broadcasts it against x,
    # so we never materialize a full (RB, TL, TS) int32 iota.
    classes = l0 + jax.lax.broadcasted_iota(jnp.int32, (1, tl, 1), 1)
    o_ref[...] = (x_ref[...][:, None, :] == classes).astype(o_ref.dtype)


def one_hot_pallas(x, L, Ldim=1, *, out_dtype=jnp.float32,
                   tile_budget_bytes=8 * 1024 * 1024):
    """x: (N, d1, ..., dk) integer array with values in [0, L).

    Returns (N, L, d1, ..., dk) one-hot (float32 by default), i.e. Ldim == 1.
    Pass out_dtype=jnp.bfloat16 to halve HBM write traffic when the consumer
    tolerates it.
    """
    assert Ldim == 1, "kernel wrapper implements the module default Ldim=1"

    orig_shape = x.shape
    N = orig_shape[0]
    spatial = tuple(orig_shape[1:])
    S = int(math.prod(spatial)) if spatial else 1

    bytes_per = jnp.dtype(out_dtype).itemsize
    # Sublane quantum of the (packed) output dtype: class tiles are rounded to
    # this so stores stay unmasked (f32: 8, bf16: 16, int8/fp8: 32).
    sub = max(8, 32 // bytes_per)

    # --- lane (spatial) axis: pad only to 128, tile with an exact divisor ---
    S_pad = _round_up(S, 128)
    ts_units = _largest_divisor_at_most(S_pad // 128, 16)   # TS <= 2048 lanes
    TS = 128 * ts_units

    # --- batch rows per block: keep the int32 input block (RB, TS) legal ----
    if N % 8 == 0:
        RB, N_pad = 8, N
    elif N <= 8:
        RB, N_pad = N, N            # block dim == full array dim is allowed
    else:
        RB, N_pad = 8, _round_up(N, 8)

    # --- class axis: pad only to the sublane quantum, tile with a divisor ---
    L_pad = _round_up(L, sub)
    max_l_units = max(1, tile_budget_bytes // (RB * TS * bytes_per * sub))
    tl_units = _largest_divisor_at_most(L_pad // sub, max_l_units)
    TL = sub * tl_units

    # --- pad the flattened int32 input (pad id -1 never matches a class) ----
    x_flat = x.reshape(N, S).astype(jnp.int32)
    if S_pad != S or N_pad != N:
        x_flat = jnp.pad(x_flat, ((0, N_pad - N), (0, S_pad - S)),
                         constant_values=-1)

    grid = (N_pad // RB, S_pad // TS, L_pad // TL)

    out_tile_bytes = RB * TL * TS * bytes_per
    in_tile_bytes = RB * TS * 4
    # Double-buffered footprint + margin; well under v7x's 64 MiB physical and
    # large enough for the 8 MiB output tiles on v5e's 16 MiB default scope.
    vmem_limit = min(48 << 20,
                     max(16 << 20,
                         2 * (out_tile_bytes + in_tile_bytes) + (4 << 20)))

    out = pl.pallas_call(
        _one_hot_kernel,
        out_shape=jax.ShapeDtypeStruct((N_pad, L_pad, S_pad), out_dtype),
        grid_spec=pltpu.PrefetchScalarGridSpec(
            num_scalar_prefetch=0,
            grid=grid,
            # Class axis is innermost: the input block index (n, s) stays
            # constant across consecutive class tiles, so its DMA is skipped.
            in_specs=[pl.BlockSpec((RB, TS), lambda n, s, l: (n, s))],
            out_specs=pl.BlockSpec((RB, TL, TS), lambda n, s, l: (n, l, s)),
        ),
        compiler_params=pltpu.CompilerParams(
            # Every grid point writes a disjoint output block -> all axes are
            # independent (lets megacore / v7x shard whichever axis it picks).
            dimension_semantics=("parallel", "parallel", "parallel"),
            vmem_limit_bytes=int(vmem_limit)),
    )(x_flat)

    # Aligned shapes (the common case) need no slice; ragged ones do.
    if N_pad != N or L_pad != L or S_pad != S:
        out = out[:N, :L, :S]
    return out.reshape((N, L) + spatial)


def _reference(x, L):
    # Pure-JAX reference: one_hot on last axis, then move L to axis 1 (Ldim=1).
    oh = jax.nn.one_hot(x, L, dtype=jnp.float32)
    perm = (0, x.ndim) + tuple(range(1, x.ndim))
    return jnp.transpose(oh, perm)


if __name__ == "__main__":
    key = jax.random.PRNGKey(0)

    # Small shapes consistent with the module: N=2, spatial 16x16, L=8 classes.
    # (S = 256 and L = 8 are aligned -> zero padding, zero post-kernel copy.)
    N, H, W, L = 2, 16, 16, 8
    x = jax.random.randint(key, (N, H, W), minval=0, maxval=L, dtype=jnp.int32)
    out = jax.block_until_ready(one_hot_pallas(x, L, Ldim=1))
    ref = _reference(x, L)
    assert out.shape == (N, L, H, W)
    assert out.dtype == jnp.float32
    assert bool(jnp.all(out == ref))

    # Ragged case exercising the (minimal) pad + slice path.
    key2 = jax.random.PRNGKey(1)
    N2, H2, W2, L2 = 3, 5, 7, 10
    x2 = jax.random.randint(key2, (N2, H2, W2), minval=0, maxval=L2,
                            dtype=jnp.int32)
    out2 = jax.block_until_ready(one_hot_pallas(x2, L2, Ldim=1))
    ref2 = _reference(x2, L2)
    assert out2.shape == (N2, L2, H2, W2)
    assert bool(jnp.all(out2 == ref2))

    print("KERNEL_OK")
</pallas_src>

<mosaic_0001>
module attributes {stable_mosaic.version = 11 : i64} {
  func.func @_one_hot_kernel(%arg0: i32, %arg1: i32, %arg2: i32, %arg3: memref<2x256xi32, #tpu.memory_space<vmem>>, %arg4: memref<2x8x256xf32, #tpu.memory_space<vmem>>) attributes {dimension_semantics = [#tpu.dimension_semantics<parallel>, #tpu.dimension_semantics<parallel>, #tpu.dimension_semantics<parallel>], iteration_bounds = array<i64: 1, 1, 1>, scalar_prefetch = 0 : i64, scratch_operands = 0 : i64, tpu.core_type = #tpu.core_type<tc>, window_params = [{transform_indices = @transform_0, window_bounds = array<i64: 2, 256>}, {transform_indices = @transform_1, window_bounds = array<i64: 2, 8, 256>}]} {
    %c8_i32 = arith.constant 8 : i32
    %0 = arith.muli %arg2, %c8_i32 : i32
    %1 = tpu.iota {dimensions = array<i32: 1>} : vector<1x8x1xi32>
    %2 = vector.broadcast %0 : i32 to vector<1x8x1xi32>
    %3 = arith.addi %2, %1 : vector<1x8x1xi32>
    %c0 = arith.constant 0 : index
    %c0_0 = arith.constant 0 : index
    %4 = vector.load %arg3[%c0, %c0_0] : memref<2x256xi32, #tpu.memory_space<vmem>>, vector<2x256xi32>
    %5 = vector.shape_cast %4 : vector<2x256xi32> to vector<2x1x256xi32>
    %6 = vector.broadcast %5 : vector<2x1x256xi32> to vector<2x8x256xi32>
    %7 = vector.broadcast %3 : vector<1x8x1xi32> to vector<2x8x256xi32>
    %8 = arith.cmpi eq, %6, %7 : vector<2x8x256xi32>
    %9 = arith.extui %8 : vector<2x8x256xi1> to vector<2x8x256xi32>
    %10 = arith.sitofp %9 : vector<2x8x256xi32> to vector<2x8x256xf32>
    %c0_1 = arith.constant 0 : index
    %c0_2 = arith.constant 0 : index
    %c0_3 = arith.constant 0 : index
    %11 = vector.load %arg4[%c0_1, %c0_2, %c0_3] : memref<2x8x256xf32, #tpu.memory_space<vmem>>, vector<2x8x256xf32>
    tpu.vector_store %arg4[%c0_1, %c0_2, %c0_3], %10 {strides = array<i32>} : memref<2x8x256xf32, #tpu.memory_space<vmem>>, vector<2x8x256xf32>,
    return
  }
  func.func @transform_0(%arg0: i32, %arg1: i32, %arg2: i32) -> (i32, i32) {
    %c0_i32 = arith.constant 0 : i32
    return %arg0, %arg1 : i32, i32
  }
  func.func @transform_1(%arg0: i32, %arg1: i32, %arg2: i32) -> (i32, i32, i32) {
    %c0_i32 = arith.constant 0 : i32
    return %arg0, %arg2, %arg1 : i32, i32, i32
  }
}

</mosaic_0001>

<bundles_post_ra>
// kernel: tpu_custom_call.1
= control target key start
LH: loop header
LB: loop body
LE: loop exit
PB: predicated region body
PF: predicated region fallthrough
CT: control target
= control target key end

     0   :  { %6 = vsyncpa [#allocation3], 0  ;;  %s181_s0 = inlined_call_operand.hbm [shape: s32[2,256], index: 0, kind: input, shape index: {}]   ;;  %s182_s1 = inlined_call_operand.hbm [shape: f32[2,8,256], index: 1, kind: output, shape index: {}]  }
   0x1   :  { %7 = vsyncpa [#allocation4], 0  ;;  %s142_s6 = smov [#allocation2]   ;;  %s94_s10 = scalar_lea.hbm %s181_s0, 64 }
   0x2   :  { %s14_s7 = sshll.u32 %s142_s6, 4  ;;  %p95_p0 = scmp.ne.s32.totalorder %s181_s0, %s94_s10  ;;  %s15_s7 = int_to_ptr.vmem [resolvable:$true] %s14_s7 }
   0x3   :  { %p98_p1 = scmp.lt.u32.totalorder %s94_s10, %s181_s0 }
   0x5   :  { %p100_p2 = pnand %p98_p1, %p95_p0 }
   0x7   :  { %103 = shalt.err (!%p100_p2)
}
   0x8   :  { %s104_s15 = scalar_lea.vmem %s15_s7, 64  ;;  %p109_p4 = scmp.lt.s32.totalorder %s15_s7, %s15_s7 }
   0x9   :  { %p105_p3 = scmp.ne.s32.totalorder %s15_s7, %s104_s15  ;;  %p110_p5 = scmp.lt.s32.totalorder %s104_s15, %s104_s15 }
   0xb   :  { %p111_p6 = por %p110_p5, %p109_p4 }
   0xd   :  { %p112_p7 = pnand %p111_p6, %p105_p3 }
   0xf   :  { %115 = shalt.err (!%p112_p7)
}
  0x10   :  { %17 = dma.hbm_to_vmem [thread:$0]  %s181_s0, 64, %s15_s7, [#allocation3]  }
  0x11   :  { %138 = dma.done.wait [#allocation3], 64  }
  0x12   :  { %139 = vsyncadd [#allocation3], 4294967232  ;;  %v22_v0 = vlaneseq  ;;  %v84_v4 = vld.sshfl [vmem:[#allocation2] sm:$0x33 pattern:$0x75316420] }
  0x13   :  { %v34_v7 = vcombine.high %v84_v4, %v84_v4  ;;  %s143_s18 = smov [#allocation5]   ;;  %v144_v10 = vmov 0.0  }
  0x14   :  { %v23_v1 = vshrl.u32 %v22_v0, 7  ;;  %s72_s19 = sshll.u32 %s143_s18, 4  ;;  %s73_s19 = int_to_ptr.vmem [resolvable:$true] %s72_s19 }
  0x15   :  { %s116_s0 = scalar_lea.vmem %s73_s19, 512  ;;  %p121_p9 = scmp.lt.s32.totalorder %s73_s19, %s73_s19 }
  0x16   :  { %v37_v2 = vsub.s32 0, %v23_v1  ;;  %v41_v3 = vsub.s32 1, %v23_v1  ;;  %p117_p8 = scmp.ne.s32.totalorder %s73_s19, %s116_s0  ;;  %p122_p10 = scmp.lt.s32.totalorder %s116_s0, %s116_s0 }
  0x18   :  { %v38_v5 = vrot.slane %v84_v4, %v37_v2  ;;  %v42_v6 = vrot.slane %v84_v4, %v41_v3  ;;  %v46_v8 = vrot.slane %v34_v7, %v37_v2  ;;  %v50_v9 = vrot.slane %v34_v7, %v41_v3  ;;  %p123_p11 = por %p122_p10, %p121_p9 }
  0x1a   :  { %vm51_vm0 = vcmp.eq.s32.totalorder %v38_v5, %v23_v1  ;;  %vm52_vm1 = vcmp.eq.s32.totalorder %v42_v6, %v23_v1  ;;  %vm53_vm2 = vcmp.eq.s32.totalorder %v46_v8, %v23_v1  ;;  %vm54_vm3 = vcmp.eq.s32.totalorder %v50_v9, %v23_v1  ;;  %p124_p12 = pnand %p123_p11, %p117_p8 }
  0x1b   :  { %v85_v11 = vsel %vm51_vm0, 1.0, %v144_v10  ;;  %v86_v12 = vsel %vm52_vm1, 1.0, %v144_v10  ;;  %v87_v13 = vsel %vm53_vm2, 1.0, %v144_v10  ;;  %v88_v14 = vsel %vm54_vm3, 1.0, %v144_v10 }
  0x1c   :  { %63 = vst [vmem:[#allocation5] sm:$0xff] %v85_v11  ;;  %64 = vst [vmem:[#allocation5 + $0x8] sm:$0xff] %v86_v12 }
  0x1d   :  { %65 = vst [vmem:[#allocation5 + $0x10] sm:$0xff] %v87_v13  ;;  %66 = vst [vmem:[#allocation5 + $0x18] sm:$0xff] %v88_v14 }
  0x1e   :  { %127 = shalt.err (!%p124_p12)
}
  0x1f   :  { %s128_s22 = scalar_lea.hbm %s182_s1, 512 }
  0x20   :  { %p129_p13 = scmp.ne.s32.totalorder %s182_s1, %s128_s22  ;;  %p132_p0 = scmp.lt.u32.totalorder %s128_s22, %s182_s1 }
  0x22   :  { %p134_p1 = pnand %p132_p0, %p129_p13 }
  0x24   :  { %137 = shalt.err (!%p134_p1)
}
  0x25   :  { %s145_s27 = smov 256   ;;  %s146_s28 = smov 16  }
  0x26   :  { %78 = dma.vmem_to_hbm [thread:$0]  %s73_s19, 512, %s182_s1, [#allocation4], %s145_s27, %s145_s27, %s146_s28  }
  0x27   :  { %140 = dma.done.wait [#allocation4], 512  }
  0x28   :  { %141 = vsyncadd [#allocation4], 4294966784 }
  0x29   :  { %82 = vsyncpa [#allocation3], 1 }
  0x2a   :  { %83 = vsyncpa [#allocation4], 1 }

</bundles_post_ra>
